<compile_context>
chip_gen: v6e
topology: v6e:2x2x1
jax: 0.10.0
libtpu: 0.0.40
codegen_flags: <defaults>
</compile_context>

<pallas_src>
import jax
import jax.numpy as jnp
from jax.experimental import pallas as pl
from jax.experimental.pallas import tpu as pltpu


def _linear_bias_kernel(x_ref, w_ref, b_ref, o_ref):
    """o = x @ W + b for one packed row tile.

    x_ref: (TM, K)  bf16 packed input rows
    w_ref: (K, PH)  bf16 block-diagonal BN-folded weight (VMEM-resident)
    b_ref: (1, PH)  f32  packed BN-folded bias
    o_ref: (TM, PH) bf16 packed, lane-dense output rows
    """
    acc = jnp.dot(x_ref[...], w_ref[...], preferred_element_type=jnp.float32)
    o_ref[...] = (acc + b_ref[...]).astype(o_ref.dtype)   # f32 epilogue, cast on store


def _fold_bn(w, b, gamma, beta, mean, var, eps):
    """Fold inference-mode BatchNorm1d into the preceding Linear."""
    inv = gamma * jax.lax.rsqrt(var + eps)                 # [H]
    return w * inv[None, :], (b - mean) * inv + beta       # [Din,H], [H]


def _round_up(a, m):
    return ((a + m - 1) // m) * m


def _choose_tile(packed_rows, tile_packed):
    """Pick the per-step packed-row tile.

    - Never larger than tile_packed (sweepable; VMEM / pipeline knob).
    - Clamped so tiny inputs are not padded up to the full default tile.
    - Targets n_tiles >= 2 so the 'parallel' grid axis can shard across the two
      v7x TensorCores instead of silently serializing onto one.
    """
    half = _round_up(max((packed_rows + 1) // 2, 1), 8)
    return max(8, min(tile_packed, half))


def _encode_branch(x, w_f, b_f, *, pack, tile_packed, compute_dtype, out_dtype):
    """y = x @ W' + b' for one branch, via a single lane-packed pallas_call."""
    r, din = x.shape
    h = w_f.shape[1]
    k = pack * din              # packed contraction dim (128 for din=16, pack=8)
    ph = pack * h               # packed lane width (256 for H=32, pack=8)

    packed_rows = -(-r // pack)
    tile = _choose_tile(packed_rows, tile_packed)
    n_tiles = -(-packed_rows // tile)
    rp = n_tiles * tile * pack                              # padded real-row count

    # Zero-pad rows, then free row-major reshape packs `pack` rows per packed row.
    xp = jnp.zeros((rp, din), x.dtype).at[:r, :].set(x)
    x_packed = xp.reshape(n_tiles * tile, k).astype(compute_dtype)

    # Block-diagonal weight so each packed row's `pack` segments hit their own W'.
    w_bd = jnp.kron(jnp.eye(pack, dtype=w_f.dtype), w_f).astype(compute_dtype)  # (k, ph)
    b_tiled = jnp.tile(b_f, pack)[None, :].astype(jnp.float32)                  # (1, ph)

    out_packed = pl.pallas_call(
        _linear_bias_kernel,
        out_shape=jax.ShapeDtypeStruct((n_tiles * tile, ph), out_dtype),
        grid_spec=pltpu.PrefetchScalarGridSpec(
            num_scalar_prefetch=0,
            grid=(n_tiles,),
            in_specs=[
                pl.BlockSpec((tile, k), lambda i: (i, 0)),   # packed input rows
                pl.BlockSpec((k, ph), lambda i: (0, 0)),     # W' (constant -> resident)
                pl.BlockSpec((1, ph), lambda i: (0, 0)),     # b' (constant -> resident)
            ],
            out_specs=pl.BlockSpec((tile, ph), lambda i: (i, 0)),
        ),
        compiler_params=pltpu.CompilerParams(
            dimension_semantics=("parallel",)),
    )(x_packed, w_bd, b_tiled)

    # Unpack rows; padded tail rows (bias-valued garbage) are sliced off here.
    return out_packed.reshape(n_tiles * tile * pack, h)[:r]


def feature_encoder_forward(batch, params, *, eps=1e-5, tile_packed=4096,
                            compute_dtype=jnp.bfloat16, out_dtype=jnp.bfloat16):
    """Pallas-backed FeatureEncoder forward.

    batch: dict with 'x' [N, Din_node], 'edge_attr' [E, Din_edge],
           'edge_index' [2, E] (passed through; see TODO on ExpanderEdgeFixer).
    params: {'node': (W,b,gamma,beta,mean,var), 'edge': (...)}  all f32.
    """
    h = params["node"][0].shape[1]
    assert params["edge"][0].shape[1] == h
    assert h <= 256 and 256 % h == 0, \
        "hidden dim must divide 256 for lane-dense row packing"
    pack = 256 // h

    w_n, b_n = _fold_bn(*params["node"], eps)
    w_e, b_e = _fold_bn(*params["edge"], eps)

    y_node = _encode_branch(batch["x"], w_n, b_n, pack=pack, tile_packed=tile_packed,
                            compute_dtype=compute_dtype, out_dtype=out_dtype)
    y_edge = _encode_branch(batch["edge_attr"], w_e, b_e, pack=pack,
                            tile_packed=tile_packed,
                            compute_dtype=compute_dtype, out_dtype=out_dtype)

    out = dict(batch)
    out["x"] = y_node
    out["edge_attr"] = y_edge
    # TODO(synk): ExpanderEdgeFixer (expander / virtual-node edge_index rewiring) is
    # integer graph-topology bookkeeping with no Pallas hot path.
    return out


def _make_params(key, din, h):
    """Deterministic synthetic parameters for Linear(din->h) + BatchNorm1d(h)."""
    k_w, k_b, k_g, k_bt, k_m, k_v = jax.random.split(key, 6)
    w = jax.random.normal(k_w, (din, h), jnp.float32) * (1.0 / jnp.sqrt(din))
    b = jax.random.normal(k_b, (h,), jnp.float32) * 0.01
    gamma = 1.0 + 0.1 * jax.random.normal(k_g, (h,), jnp.float32)
    beta = 0.1 * jax.random.normal(k_bt, (h,), jnp.float32)
    mean = 0.1 * jax.random.normal(k_m, (h,), jnp.float32)
    var = jnp.abs(jax.random.normal(k_v, (h,), jnp.float32)) + 0.5
    return w, b, gamma, beta, mean, var


def _reference_f32(batch, params, eps=1e-5):
    """Un-fused f32 reference: Linear + inference BatchNorm1d."""
    def lin_bn(x, w, b, g, bt, m, v):
        y = x @ w + b
        return (y - m) / jnp.sqrt(v + eps) * g + bt
    return {"x": lin_bn(batch["x"], *params["node"]),
            "edge_attr": lin_bn(batch["edge_attr"], *params["edge"])}


def _reference_matched(batch, params, eps=1e-5, compute_dtype=jnp.bfloat16,
                       out_dtype=jnp.bfloat16):
    """Reference with the same BN-fold + bf16 operand/output rounding as the kernel."""
    def branch(x, p):
        w_f, b_f = _fold_bn(*p, eps)
        xq = x.astype(compute_dtype).astype(jnp.float32)
        wq = w_f.astype(compute_dtype).astype(jnp.float32)
        return (xq @ wq + b_f).astype(out_dtype)
    return {"x": branch(batch["x"], params["node"]),
            "edge_attr": branch(batch["edge_attr"], params["edge"])}


if __name__ == "__main__":
    key = jax.random.PRNGKey(0)
    k_xn, k_xe, k_ei, k_pn, k_pe = jax.random.split(key, 5)

    # Small shapes: N nodes / E edges, node/edge input dims, hidden dim (cfg.gnn.dim_inner).
    N, E = 128, 256
    DIN_NODE, DIN_EDGE, HIDDEN = 16, 8, 32

    batch = {
        "x": jax.random.normal(k_xn, (N, DIN_NODE), jnp.float32),
        "edge_attr": jax.random.normal(k_xe, (E, DIN_EDGE), jnp.float32),
        "edge_index": jax.random.randint(k_ei, (2, E), 0, N, jnp.int32),
    }
    params = {
        "node": _make_params(k_pn, DIN_NODE, HIDDEN),
        "edge": _make_params(k_pe, DIN_EDGE, HIDDEN),
    }

    out = feature_encoder_forward(batch, params)
    jax.block_until_ready(out)

    assert out["x"].shape == (N, HIDDEN)
    assert out["edge_attr"].shape == (E, HIDDEN)
    assert out["x"].dtype == jnp.bfloat16
    assert out["edge_attr"].dtype == jnp.bfloat16

    y_node = out["x"].astype(jnp.float32)
    y_edge = out["edge_attr"].astype(jnp.float32)

    # Tight check vs. a reference with identical BN-fold + bf16 operand/output rounding.
    ref_m = _reference_matched(batch, params)
    assert jnp.allclose(y_node, ref_m["x"].astype(jnp.float32), atol=2e-2, rtol=2e-2)
    assert jnp.allclose(y_edge, ref_m["edge_attr"].astype(jnp.float32), atol=2e-2, rtol=2e-2)

    # Loose check vs. the true un-fused f32 Linear+BN (bf16 operand + output precision).
    ref_f = _reference_f32(batch, params)
    assert jnp.allclose(y_node, ref_f["x"], atol=1e-1, rtol=5e-2)
    assert jnp.allclose(y_edge, ref_f["edge_attr"], atol=1e-1, rtol=5e-2)

    print("KERNEL_OK")
</pallas_src>

<mosaic_0001>
module attributes {stable_mosaic.version = 11 : i64} {
  func.func @_linear_bias_kernel(%arg0: i32, %arg1: memref<8x128xbf16, #tpu.memory_space<vmem>>, %arg2: memref<128x256xbf16, #tpu.memory_space<vmem>>, %arg3: memref<1x256xf32, #tpu.memory_space<vmem>>, %arg4: memref<8x256xbf16, #tpu.memory_space<vmem>>) attributes {dimension_semantics = [#tpu.dimension_semantics<parallel>], iteration_bounds = array<i64: 2>, scalar_prefetch = 0 : i64, scratch_operands = 0 : i64, tpu.core_type = #tpu.core_type<tc>, window_params = [{transform_indices = @transform_0, window_bounds = array<i64: 8, 128>}, {pipeline_mode = #tpu.pipeline_mode<synchronous>, transform_indices = @transform_1, window_bounds = array<i64: 128, 256>}, {pipeline_mode = #tpu.pipeline_mode<synchronous>, transform_indices = @transform_2, window_bounds = array<i64: 1, 256>}, {transform_indices = @transform_3, window_bounds = array<i64: 8, 256>}]} {
    %c0 = arith.constant 0 : index
    %c0_0 = arith.constant 0 : index
    %0 = vector.load %arg1[%c0, %c0_0] : memref<8x128xbf16, #tpu.memory_space<vmem>>, vector<8x128xbf16>
    %c0_1 = arith.constant 0 : index
    %c0_2 = arith.constant 0 : index
    %1 = vector.load %arg2[%c0_1, %c0_2] : memref<128x256xbf16, #tpu.memory_space<vmem>>, vector<128x256xbf16>
    %cst = arith.constant dense<0.000000e+00> : vector<8x256xf32>
    %2 = tpu.matmul %0, %1, %cst {dimension_numbers = #tpu.dot_dimension_numbers<[1], [0], [0], [1], [0, 0, 1, 1], [], []>} : vector<8x128xbf16>, vector<128x256xbf16>, vector<8x256xf32> -> vector<8x256xf32>
    %c0_3 = arith.constant 0 : index
    %c0_4 = arith.constant 0 : index
    %3 = vector.load %arg3[%c0_3, %c0_4] : memref<1x256xf32, #tpu.memory_space<vmem>>, vector<1x256xf32>
    %4 = vector.broadcast %3 : vector<1x256xf32> to vector<8x256xf32>
    %5 = arith.addf %2, %4 : vector<8x256xf32>
    %6 = arith.truncf %5 : vector<8x256xf32> to vector<8x256xbf16>
    %c0_5 = arith.constant 0 : index
    %c0_6 = arith.constant 0 : index
    %7 = vector.load %arg4[%c0_5, %c0_6] : memref<8x256xbf16, #tpu.memory_space<vmem>>, vector<8x256xbf16>
    tpu.vector_store %arg4[%c0_5, %c0_6], %6 {strides = array<i32>} : memref<8x256xbf16, #tpu.memory_space<vmem>>, vector<8x256xbf16>,
    return
  }
  func.func @transform_0(%arg0: i32) -> (i32, i32) {
    %c0_i32 = arith.constant 0 : i32
    %c0_i32_0 = arith.constant 0 : i32
    return %arg0, %c0_i32 : i32, i32
  }
  func.func @transform_1(%arg0: i32) -> (i32, i32) {
    %c0_i32 = arith.constant 0 : i32
    %c0_i32_0 = arith.constant 0 : i32
    %c0_i32_1 = arith.constant 0 : i32
    return %c0_i32, %c0_i32_0 : i32, i32
  }
  func.func @transform_2(%arg0: i32) -> (i32, i32) {
    %c0_i32 = arith.constant 0 : i32
    %c0_i32_0 = arith.constant 0 : i32
    %c0_i32_1 = arith.constant 0 : i32
    return %c0_i32, %c0_i32_0 : i32, i32
  }
  func.func @transform_3(%arg0: i32) -> (i32, i32) {
    %c0_i32 = arith.constant 0 : i32
    %c0_i32_0 = arith.constant 0 : i32
    return %arg0, %c0_i32 : i32, i32
  }
}

</mosaic_0001>

<bundles_post_ra>
// kernel: tpu_custom_call.1
= control target key start
LH: loop header
LB: loop body
LE: loop exit
PB: predicated region body
PF: predicated region fallthrough
CT: control target
= control target key end

     0   :  { %8 = vsyncpa [#allocation3], 0  ;;  %s891_s0 = inlined_call_operand.hbm [shape: bf16[16,128], index: 0, kind: input, shape index: {}]   ;;  %s892_s1 = inlined_call_operand.hbm [shape: bf16[128,256], index: 1, kind: input, shape index: {}]   ;;  %s893_s2 = inlined_call_operand.vmem [shape: f32[1,256], index: 2, kind: input, shape index: {}]   ;;  %s894_s3 = inlined_call_operand.hbm [shape: bf16[16,256], index: 3, kind: output, shape index: {}]  }
   0x1   :  { %10 = vsyncpa [#allocation3 + $0x1], 0 }
   0x2   :  { %11 = vsyncpa [#allocation6], 0 }
   0x3   :  { %12 = vsyncpa [#allocation4], 0 }
   0x4   :  { %14 = vsyncpa [#allocation4 + $0x1], 0  ;;  %s724_s12 = smov 0   ;;  %s726_s13 = smov 0  }
   0x5   :  { %s728_s14 = smov 0   ;;  %s730_s15 = smov 0  }
   0x6 LB: > { %s745_s16 = sadd.s32 4294967295, %s696_s15   ;;  %s456_s17 = sadd.s32 4294967294, %s696_s15   ;;  %s696_s15 = sphi %s730_s15, %s916_s15   ;;  %s692_s14 = sphi %s728_s14, %s915_s14   ;;  %s688_s13 = sphi %s726_s13, %s914_s13   ;;  %s684_s12 = sphi %s724_s12, %s913_s12  }
   0x7   : > { %p40_p0 = scmp.ne.s32.totalorder %s688_s13, %s684_s12  ;;  %p895_p1 = scmp.eq.s32.totalorder %s745_s16, 0 }
   0x8   : > { %p112_p3 = scmp.eq.s32.totalorder %s456_s17, 1  ;;  %p457_p5 = scmp.ge.s32.totalorder %s696_s15, 1 }
   0x9   : > { %p754_p4 = por %p895_p1, %p40_p0  ;;  %p119_p7 = scmp.lt.s32.totalorder %s696_s15, 3 }
   0xa   : > { %p759_p6 = por %p112_p3, %p40_p0  ;;  %s698_s21 = smov [#allocation5]  }
   0xb   : > { %s899_s18 = scalar_select %p754_p4, 1, 0 }
   0xc   : > { %s900_s19 = scalar_select %p759_p6, 1, 0 }
   0xd   : > { %p764_p8 = pnand %p457_p5, %p119_p7  ;;  %s131_s22 = sshll.u32 %s698_s21, 4  ;;  %s132_s22 = int_to_ptr.vmem [resolvable:$true] %s131_s22 }
   0xe   : > { %s778_s24 = sadd.s32 1, %s696_s15   ;;  %s27_s25 = sadd.s32 1, %s692_s14 }
   0xf   : > { %s901_s20 = scalar_select %p764_p8, 1, 0 }
  0x10   : > { %p498_p9 = pneg %p764_p8  ;;  %s24_s26 = ssub.s32 %s696_s15, %s778_s24 }
  0x11   : > { %s585_s27 = scalar_lea.vmem %s132_s22, 2048  ;;  %p593_p5 = scmp.lt.s32.totalorder %s132_s22, %s132_s22 }
  0x12   : > { %p773_p11 = pnand %p498_p9, %p895_p1  ;;  %p586_p13 = scmp.ne.s32.totalorder %s132_s22, %s585_s27 }
  0x13   : > { %p594_p7 = scmp.lt.s32.totalorder %s585_s27, %s585_s27 }
  0x14   : > { %p576_p12 = pneg %p773_p11 }
  0x15   : > { %p595_p10 = por %p594_p7, %p593_p5 }
  0x16   : > { %p588_p0 = pnand %p586_p13, %p576_p12 }
  0x18   : > { %p589_p3 = pneg %p588_p0 }
  0x1a   : > { %p596_p2 = pnand %p595_p10, %p589_p3 }
  0x1c   : > { %599 = shalt.err (!%p596_p2)
}
  0x1d   : > { %s699_s28 = smov 128   ;;  %s700_s29 = smov 8  }
  0x1e   : > { %501 = dma.hbm_to_vmem [thread:$0]  (!%p773_p11), %s892_s1, 2048, %s132_s22, [#allocation6], %s699_s28, %s699_s28, %s700_s29  }
  0x1f   : > { %p25_p9 = scmp.eq.s32.totalorder %s24_s26, 0  ;;  %p34_p12 = scmp.ne.s32.totalorder %s692_s14, %s688_s13 }
  0x20   : > { %p35_p10 = scmp.eq.s32.totalorder %s696_s15, 0  ;;  %p511_p2 = scmp.lt.s32.totalorder %s696_s15, 2 }
  0x21   : > { %s795_s5 = scalar_select %p25_p9, %s692_s14, %s27_s25  }
  0x22   : > { %p36_p13 = por %p35_p10, %p34_p12  ;;  %p903_p0 = scmp.eq.s32.totalorder %s745_s16, 1 }
  0x23   : > { %s148_s7 = sand.u32 1, %s692_s14   ;;  %s461_s8 = sshll.u32 %s696_s15, 6 }
  0x24   : > { %p799_p3 = por %p903_p0, %p34_p12  ;;  %s460_s9 = sshll.u32 %s148_s7, 2 }
  0x25   : > { %s808_s17 = scalar_lea.hbm %s891_s0, %s461_s8  ;;  %s152_s21 = scalar_lea.vmem [#allocation2], %s460_s9 }
  0x26   : > { %s904_s6 = scalar_select %p799_p3, 1, 0 }
  0x27   : > { %s159_s22 = sshll.u32 %s152_s21, 4  ;;  %p810_p11 = pnand %p511_p2, %p36_p13  ;;  %s160_s22 = int_to_ptr.vmem [resolvable:$true] %s159_s22 }
  0x28   : > { %s149_s25 = scalar_lea.sflag [#allocation3], %s148_s7  ;;  %s600_s26 = scalar_lea.hbm %s808_s17, 64 }
  0x29   : > { %p601_p5 = scmp.ne.s32.totalorder %s808_s17, %s600_s26  ;;  %p602_p7 = pneg %p810_p11 }
  0x2a   : > { %s605_s29 = scalar_lea.hbm %s891_s0, 128  ;;  %p606_p10 = scmp.lt.s32.totalorder %s808_s17, %s891_s0 }
  0x2b   : > { %p603_p9 = pnand %p602_p7, %p601_p5  ;;  %p607_p2 = scmp.lt.s32.totalorder %s605_s29, %s600_s26 }
  0x2d   : > { %p604_p12 = pneg %p603_p9  ;;  %p608_p13 = por %p607_p2, %p606_p10 }
  0x2f   : > { %p609_p0 = pnand %p608_p13, %p604_p12 }
  0x31   : > { %612 = shalt.err (!%p609_p0)
}
  0x32   : > { %s613_s8 = scalar_lea.vmem %s160_s22, 64  ;;  %s701_s7 = smov [#allocation2]  }
  0x33   : > { %p614_p1 = scmp.ne.s32.totalorder %s160_s22, %s613_s8  ;;  %s618_s9 = sshll.u32 %s701_s7, 4  ;;  %s619_s9 = int_to_ptr.vmem [resolvable:$false] %s618_s9 }
  0x34   : > { %s620_s10 = scalar_lea.vmem %s619_s9, 128  ;;  %p621_p5 = scmp.lt.s32.totalorder %s160_s22, %s619_s9 }
  0x35   : > { %p616_p6 = pnand %p614_p1, %p602_p7  ;;  %p622_p9 = scmp.lt.s32.totalorder %s620_s10, %s613_s8 }
  0x37   : > { %p617_p3 = pneg %p616_p6  ;;  %p623_p4 = por %p622_p9, %p621_p5 }
  0x39   : > { %p624_p8 = pnand %p623_p4, %p617_p3 }
  0x3b   : > { %627 = shalt.err (!%p624_p8)
}
  0x3c   : > { %505 = dma.hbm_to_vmem [thread:$0]  (!%p810_p11), %s808_s17, 64, %s160_s22, %s149_s25  }
  0x3d   : > { %p906_p12 = scmp.ne.s32.totalorder %s901_s20, 0 }
  0x3e   : > { %s831_s11 = sand.u32 (!%p906_p12), 1, %s688_s13   ;;  %p907_p1 = scmp.ne.s32.totalorder (!%p906_p12), %s899_s18, 0 }
  0x3f   : > { %168 = sbr.rel (%p906_p12) target bundleno = 317 (0x13d), region = 32  ;;  %s463_s21 = sshll.u32 (!%p906_p12), %s831_s11, 2 }
  0x40   : > { %s171_s26 = scalar_lea.sflag (!%p906_p12), [#allocation3], %s831_s11  ;;  %s835_s27 = scalar_lea.vmem (!%p906_p12), [#allocation2], %s463_s21 }
  0x44   : > { %671 = dma.done.wait (%p907_p1), %s171_s26, 64  }
  0x45   : > { %673 = vsyncadd (%p907_p1), %s171_s26, 4294967232  ;;  %p908_p4 = scmp.eq.s32.totalorder %s745_s16, 0 }
  0x47   : > { %675 = dma.done.wait (%p908_p4), [#allocation6], 2048   ;;  %p909_p6 = pmov %p908_p4 }
  0x48   : > { %v702_v0 = vmov 0   ;;  %v550_v1 = vld [vmem:[#allocation5 + $0x74] ss:$8 sps:$4 sm:$0xff]   ;;  %v552_v2 = vld [vmem:[#allocation5 + $0x70] ss:$8 sps:$4 sm:$0xff]   ;;  %v221_v18 = vlaneseq  ;;  %s465_s17 = sshll.u32 %s831_s11, 3 }
  0x49   : > { %677 = vsyncadd (%p909_p6), [#allocation6], 4294965248  ;;  %343 = vmatprep.mubr.bf16.mxu0 %v702_v0  ;;  %311 = vmatprep.subr.bf16.mxu0 %v550_v1  ;;  %v553_v3 = vld [vmem:[#allocation5 + $0x64] ss:$8 sps:$4 sm:$0xff]   ;;  %v555_v4 = vld [vmem:[#allocation5 + $0x60] ss:$8 sps:$4 sm:$0xff]  }
  0x4a   : > { %312 = vmatpush1.bf16.msra.mxu0 %v552_v2  ;;  %v556_v5 = vld [vmem:[#allocation5 + $0x54] ss:$8 sps:$4 sm:$0xff]   ;;  %v558_v6 = vld [vmem:[#allocation5 + $0x50] ss:$8 sps:$4 sm:$0xff]   ;;  %v559_v7 = vld [vmem:[#allocation5 + $0x44] ss:$8 sps:$4 sm:$0xff]  }
  0x4b   : > { %313 = vmatprep.subr.bf16.mxu0 %v553_v3  ;;  %v561_v8 = vld [vmem:[#allocation5 + $0x40] ss:$8 sps:$4 sm:$0xff]   ;;  %v562_v9 = vld [vmem:[#allocation5 + $0x34] ss:$8 sps:$4 sm:$0xff]   ;;  %v564_v10 = vld [vmem:[#allocation5 + $0x30] ss:$8 sps:$4 sm:$0xff]  }
  0x4c   : > { %v565_v11 = vld [vmem:[#allocation5 + $0x24] ss:$8 sps:$4 sm:$0xff]   ;;  %v567_v12 = vld [vmem:[#allocation5 + $0x20] ss:$8 sps:$4 sm:$0xff]   ;;  %v568_v13 = vld [vmem:[#allocation5 + $0x14] ss:$8 sps:$4 sm:$0xff]  }
  0x4d   : > { %v570_v14 = vld [vmem:[#allocation5 + $0x10] ss:$8 sps:$4 sm:$0xff]   ;;  %v571_v15 = vld [vmem:[#allocation5 + $0x4] ss:$8 sps:$4 sm:$0xff]   ;;  %v573_v16 = vld [vmem:[#allocation5] ss:$8 sps:$4 sm:$0xff]  }
  0x4e   : > { %314 = vmatpush1.bf16.msra.mxu0 %v555_v4  ;;  %v202_v17 = vld [vmem:[%s835_s27] sm:$0xf]  ;;  %v222_v19 = vshrl.u32 %v221_v18, 7  ;;  %s489_s22 = sshll.u32 %s745_s16, 7  ;;  %s200_s23 = scalar_lea.vmem [#allocation7], %s465_s17 }
  0x4f   : > { %315 = vmatprep.subr.bf16.mxu0 %v556_v5  ;;  %v219_v22 = vld [vmem:[%s893_s2] sm:$0x3]  ;;  %s376_s25 = sshll.u32 %s200_s23, 4  ;;  %s854_s30 = scalar_lea.hbm %s894_s3, %s489_s22  ;;  %s377_s25 = int_to_ptr.vmem [resolvable:$true] %s376_s25 }
  0x50   : > { %v223_v20 = vsub.s32 0, %v222_v19  ;;  %v227_v21 = vsub.s32 1, %v222_v19  ;;  %s362_s4 = scalar_lea.sflag [#allocation4], %s831_s11  ;;  %s628_s8 = scalar_lea.vmem %s377_s25, 128 }
  0x51   : > { %p629_p8 = scmp.ne.s32.totalorder %s377_s25, %s628_s8  ;;  %p910_p3 = scmp.ne.s32.totalorder %s904_s6, 0 }
  0x52   : > { %316 = vmatpush1.bf16.msra.mxu0 %v558_v6  ;;  %v224_v23 = vrot.slane %v219_v22, %v223_v20  ;;  %v228_v24 = vrot.slane %v219_v22, %v227_v21  ;;  %s703_s16 = smov [#allocation7]  }
  0x53   : > { %317 = vmatprep.subr.bf16.mxu0 %v559_v7  ;;  %p630_p11 = pnand %p629_p8, %p910_p3  ;;  %s632_s7 = sshll.u32 %s703_s16, 4  ;;  %s633_s7 = int_to_ptr.vmem [resolvable:$false] %s632_s7 }
  0x54   : > { %s634_s9 = scalar_lea.vmem %s633_s7, 256  ;;  %p635_p10 = scmp.lt.s32.totalorder %s377_s25, %s633_s7 }
  0x55   : > { %p631_p7 = pneg %p630_p11  ;;  %p636_p2 = scmp.lt.s32.totalorder %s634_s9, %s628_s8 }
  0x56   : > { %318 = vmatpush1.bf16.msra.mxu0 %v561_v8 }
  0x57   : > { %319 = vmatprep.subr.bf16.mxu0 %v562_v9  ;;  %p637_p13 = por %p636_p2, %p635_p10 }
  0x59   : > { %p638_p0 = pnand %p637_p13, %p631_p7 }
  0x5a   : > { %320 = vmatpush1.bf16.msra.mxu0 %v564_v10 }
  0x5b   : > { %321 = vmatprep.subr.bf16.mxu0 %v565_v11 }
  0x5e   : > { %322 = vmatpush1.bf16.msra.mxu0 %v567_v12 }
  0x5f   : > { %323 = vmatprep.subr.bf16.mxu0 %v568_v13 }
  0x62   : > { %324 = vmatpush1.bf16.msra.mxu0 %v570_v14 }
  0x63   : > { %325 = vmatprep.subr.bf16.mxu0 %v571_v15 }
  0x66   : > { %326 = vmatpush1.bf16.msra.mxu0 %v573_v16 }
  0x69   : > { %344 = vmatmul.mubr.bf16.vlgmr.msra.gmra.mxu0 %v202_v17 }
 0x129   : > { %v345_v25 = vpop.f32.mrf.mxu0 }
 0x12a   : > { %v346_v27 = vadd.f32 %v345_v25, %v224_v23 }
 0x12b   : > { %v347_v26 = vpop.f32.mrf.mxu0 }
 0x12c   : > { %v348_v28 = vadd.f32 %v347_v26, %v228_v24 }
 0x12d   : > { %v349_v29 = vpop.f32.mrf.mxu0 }
 0x12e   : > { %v488_v30 = vpack.c.bf16 %v348_v28, %v346_v27 }
 0x12f   : > { %v350_v31 = vpop.f32.mrf.mxu0 }
 0x130   : > { %360 = vst [vmem:[%s200_s23] sm:$0xff] %v488_v30 }
 0x131   : > { %641 = shalt.err (!%p638_p0)
}
 0x132   : > { %s642_s10 = scalar_lea.hbm %s854_s30, 128  ;;  %s646_s26 = scalar_lea.hbm %s894_s3, 256 }
 0x133   : > { %p643_p5 = scmp.ne.s32.totalorder %s854_s30, %s642_s10  ;;  %p647_p1 = scmp.lt.s32.totalorder %s854_s30, %s894_s3 }
 0x134   : > { %p648_p4 = scmp.lt.s32.totalorder %s646_s26, %s642_s10 }
 0x135   : > { %p644_p9 = pnand %p643_p5, %p910_p3 }
 0x136   : > { %p649_p6 = por %p648_p4, %p647_p1 }
 0x137   : > { %p645_p12 = pneg %p644_p9 }
 0x139   : > { %p650_p8 = pnand %p649_p6, %p645_p12 }
 0x13b   : > { %653 = shalt.err (!%p650_p8)
}
 0x13c   : > { %496 = dma.vmem_to_hbm [thread:$0]  (%p910_p3), %s377_s25, 128, %s854_s30, %s362_s4  }
 0x13d PF: > { %s388_s20 = sand.u32 1, %s684_s12   ;;  %p911_p11 = scmp.ne.s32.totalorder %s900_s19, 0 }
 0x13e   : > { %p912_p7 = scmp.ge.s32.totalorder %s696_s15, 2  ;;  %s389_s17 = scalar_lea.sflag [#allocation4], %s388_s20 }
 0x140   : > { %p507_p10 = pnand %p912_p7, %p911_p11 }
 0x142   : > { %p508_p2 = pneg %p507_p10 }
 0x144   : > { %679 = dma.done.wait (%p508_p2), %s389_s17, 128  }
 0x145   : > { %681 = vsyncadd (%p508_p2), %s389_s17, 4294967168  ;;  %p17_p13 = scmp.ge.s32.totalorder %s778_s24, 4   ;;  %s913_s12 = smov %s688_s13 }
 0x146   : > { %s914_s13 = smov %s692_s14  ;;  %s915_s14 = smov %s795_s5 }
 0x147   : > { %s916_s15 = smov %s778_s24  ;;  %19 = sbr.rel (!%p17_p13) target bundleno = 6 (0x6), region = 81 }
 0x14c   :  { %394 = vsyncpa [#allocation3], 1 }
 0x14d   :  { %396 = vsyncpa [#allocation3 + $0x1], 1 }
 0x14e   :  { %397 = vsyncpa [#allocation6], 1 }
 0x14f   :  { %398 = vsyncpa [#allocation4], 1 }
 0x150   :  { %400 = vsyncpa [#allocation4 + $0x1], 1 }

</bundles_post_ra>
